<compile_context>
chip_gen: v6e
topology: v6e:2x2x1
jax: 0.10.0
libtpu: 0.0.40
codegen_flags: <defaults>
</compile_context>

<pallas_src>
import functools

import jax
import jax.numpy as jnp
from jax.experimental import pallas as pl
from jax.experimental.pallas import tpu as pltpu

# Maximum number of concurrent DMA descriptors (one per leading-axis chunk).
_MAX_DMA_CHUNKS = 4
# Only bother splitting across DMA engines when each chunk still moves >= 1 MiB.
_MIN_CHUNK_BYTES = 1 * 1024 * 1024


def _dma_identity_kernel(x_hbm, o_hbm, copy_sems, *, n_chunks):
    """Copy x -> o entirely with HBM->HBM DMAs (no VMEM staging)."""
    if n_chunks <= 1:
        cp = pltpu.make_async_copy(x_hbm, o_hbm, copy_sems.at[0])
        cp.start()
        cp.wait()
        return

    # Static partition of the leading (most-major) axis into contiguous slabs;
    # each slab gets its own DMA descriptor + semaphore so the copies overlap.
    n0 = x_hbm.shape[0]
    bounds = [(c * n0) // n_chunks for c in range(n_chunks + 1)]
    copies = []
    for c in range(n_chunks):
        lo, hi = bounds[c], bounds[c + 1]
        if hi <= lo:
            continue
        cp = pltpu.make_async_copy(
            x_hbm.at[pl.ds(lo, hi - lo)],
            o_hbm.at[pl.ds(lo, hi - lo)],
            copy_sems.at[c],
        )
        cp.start()
        copies.append(cp)
    for cp in copies:
        cp.wait()


def _num_dma_chunks(x):
    if x.ndim == 0 or x.shape[0] < 2:
        return 1
    total_bytes = x.size * jnp.dtype(x.dtype).itemsize
    by_size = max(1, total_bytes // _MIN_CHUNK_BYTES)
    return int(min(_MAX_DMA_CHUNKS, x.shape[0], by_size))


def activation_map(x, *, materialize_copy=True):
    """Pallas implementation of ActivationMap.forward: returns x unchanged.

    materialize_copy=False is the asymptotic optimum for an identity forward
    (zero HBM traffic, no fresh allocation) and is what a caller that can
    donate / reuse the input buffer should use.  materialize_copy=True
    produces a fresh buffer via a roofline HBM->HBM DMA copy.
    """
    if not materialize_copy:
        return x
    if x.size == 0:
        return x

    n_chunks = _num_dma_chunks(x)
    return pl.pallas_call(
        functools.partial(_dma_identity_kernel, n_chunks=n_chunks),
        out_shape=jax.ShapeDtypeStruct(x.shape, x.dtype),
        in_specs=[pl.BlockSpec(memory_space=pl.ANY)],
        out_specs=pl.BlockSpec(memory_space=pl.ANY),
        scratch_shapes=[pltpu.SemaphoreType.DMA((n_chunks,))],
    )(x)


if __name__ == "__main__":
    key = jax.random.PRNGKey(0)
    # Small NCHW input consistent with a conv-style activation map.
    x = jax.random.normal(key, (2, 4, 16, 16), dtype=jnp.float32)

    # Materialized Pallas HBM->HBM DMA copy.
    y = activation_map(x)
    jax.block_until_ready(y)
    assert y.shape == x.shape and y.dtype == x.dtype
    assert bool(jnp.array_equal(y, x))

    # Odd, non-128-multiple shape: no padding path exists any more.
    x_odd = jax.random.normal(jax.random.PRNGKey(1), (3, 5, 7), dtype=jnp.float32)
    y_odd = activation_map(x_odd)
    jax.block_until_ready(y_odd)
    assert y_odd.shape == x_odd.shape and bool(jnp.array_equal(y_odd, x_odd))

    # Zero-traffic short-circuit (identity, caller keeps its own buffer).
    y_alias = activation_map(x, materialize_copy=False)
    assert y_alias is x

    print("KERNEL_OK")
</pallas_src>

<mosaic_0001>
module attributes {stable_mosaic.version = 11 : i64} {
  func.func @_dma_identity_kernel(%arg0: memref<2x4x16x16xf32, #tpu.memory_space<any>>, %arg1: memref<2x4x16x16xf32, #tpu.memory_space<any>>, %arg2: memref<1x!tpu.dma_semaphore, #tpu.memory_space<semaphore_mem>>) attributes {dimension_semantics = [], scalar_prefetch = 0 : i64, scratch_operands = 1 : i64, tpu.core_type = #tpu.core_type<tc>} {
    %c0_i32 = arith.constant 0 : i32
    %0 = tpu.memref_slice %arg2[%c0_i32] : memref<1x!tpu.dma_semaphore, #tpu.memory_space<semaphore_mem>> -> memref<1x!tpu.dma_semaphore, #tpu.memory_space<semaphore_mem>>
    %1 = tpu.memref_squeeze %0 : memref<1x!tpu.dma_semaphore, #tpu.memory_space<semaphore_mem>> -> memref<!tpu.dma_semaphore, #tpu.memory_space<semaphore_mem>>
    tpu.enqueue_dma source(%arg0 : memref<2x4x16x16xf32, #tpu.memory_space<any>>) target(%arg1 : memref<2x4x16x16xf32, #tpu.memory_space<any>>) target_semaphore(%1 : memref<!tpu.dma_semaphore, #tpu.memory_space<semaphore_mem>>)
    %c0_i32_0 = arith.constant 0 : i32
    %2 = tpu.memref_slice %arg2[%c0_i32_0] : memref<1x!tpu.dma_semaphore, #tpu.memory_space<semaphore_mem>> -> memref<1x!tpu.dma_semaphore, #tpu.memory_space<semaphore_mem>>
    %3 = tpu.memref_squeeze %2 : memref<1x!tpu.dma_semaphore, #tpu.memory_space<semaphore_mem>> -> memref<!tpu.dma_semaphore, #tpu.memory_space<semaphore_mem>>
    tpu.wait_dma2 semaphore(%3 : memref<!tpu.dma_semaphore, #tpu.memory_space<semaphore_mem>>) src(%arg0 : memref<2x4x16x16xf32, #tpu.memory_space<any>>) dst(%arg1 : memref<2x4x16x16xf32, #tpu.memory_space<any>>)
    return
  }
}

</mosaic_0001>

<bundles_post_ra>
// kernel: tpu_custom_call.1
= control target key start
LH: loop header
LB: loop body
LE: loop exit
PB: predicated region body
PF: predicated region fallthrough
CT: control target
= control target key end

     0   :  { %s30_s6 = smov [#allocation2]   ;;  %s31_s7 = smov 131072   ;;  %s49_s0 = inlined_call_operand.hbm [shape: f32[2,4,16,16], index: 0, kind: input, shape index: {}]   ;;  %s50_s1 = inlined_call_operand.hbm [shape: f32[2,4,16,16], index: 1, kind: output, shape index: {}]  }
   0x1   :  { %s32_s8 = smov 0  }
   0x2   :  { %12 = dma.general %s49_s0, 2048, %s50_s1, %s30_s6, %s31_s7, [#allocation4], %s32_s8, 0  }
   0x3   :  { %28 = dma.done.wait [#allocation2], 2048 }
   0x4   :  { %29 = vsyncadd [#allocation2], 4294965248 }
   0x5   :  { %18 = vsyncmov [#allocation2] }
   0x8   :  { %s19_s13 = vpop.sfrf %18 }
   0x9   :  { %p24_p0 = scmp.ne.s32.totalorder %s19_s13, 0 }
   0xb   :  { %23 = shalt.err (%p24_p0)  }

</bundles_post_ra>
